<compile_context>
chip_gen: v7x
topology: tpu7x:2x2x1
jax: 0.10.0
libtpu: 0.0.40
codegen_flags: <defaults>
</compile_context>

<pallas_src>
import jax
import jax.numpy as jnp
from jax.experimental import pallas as pl
from jax.experimental.pallas import tpu as pltpu

_LANES = 128  # TPU vreg lane width; last dim of every VMEM block stays lane-dense.


# --------------------------------------------------------------------------
# Small helpers
# --------------------------------------------------------------------------
def _itemsize(dtype):
    return jnp.dtype(dtype).itemsize


def _vmem_capacity_bytes():
    # Trace-time hardware query; conservative fallback if unavailable.
    try:
        info = pltpu.get_tpu_info()
        cap = getattr(info, "vmem_capacity_bytes", None)
        if cap:
            return int(cap)
    except Exception:
        pass
    return 64 << 20  # v7x per-TC physical VMEM (smallest current generation)


def _sublane_granule(dtype):
    # Native packed sublane tile: 8 rows (32-bit), 16 (16-bit), 32 (8-bit).
    return max(8, 32 // _itemsize(dtype))


# --------------------------------------------------------------------------
# Materialize path A (default): direct HBM -> HBM DMA, no VMEM staging.
# --------------------------------------------------------------------------
def _dma_copy(x, *, max_dma_chunks=4, chunk_threshold_bytes=8 << 20):
    """Materializing identity copy of `x` driven entirely by the DMA engines."""
    nbytes = x.size * _itemsize(x.dtype)

    # For large tensors, split along the leading axis into a few concurrent
    # DMAs (static chunk boundaries) to engage multiple DMA engines.
    n_chunks = 1
    bounds = None
    if x.ndim >= 1 and x.shape[0] >= 2 and nbytes >= chunk_threshold_bytes:
        lead = x.shape[0]
        n_chunks = min(max_dma_chunks, lead)
        bounds = sorted({(i * lead) // n_chunks for i in range(n_chunks + 1)})
        n_chunks = len(bounds) - 1

    def kernel(x_hbm, o_hbm, sems):
        if n_chunks == 1:
            cp = pltpu.make_async_copy(x_hbm, o_hbm, sems.at[0])
            cp.start()
            cp.wait()
        else:
            copies = []
            for c in range(n_chunks):
                s, e = bounds[c], bounds[c + 1]
                cp = pltpu.make_async_copy(
                    x_hbm.at[pl.ds(s, e - s)],
                    o_hbm.at[pl.ds(s, e - s)],
                    sems.at[c],
                )
                cp.start()
                copies.append(cp)
            for cp in copies:
                cp.wait()

    return pl.pallas_call(
        kernel,
        out_shape=jax.ShapeDtypeStruct(x.shape, x.dtype),
        in_specs=[pl.BlockSpec(memory_space=pl.ANY)],
        out_specs=pl.BlockSpec(memory_space=pl.ANY),
        scratch_shapes=[pltpu.SemaphoreType.DMA((n_chunks,))],
        compiler_params=pltpu.CompilerParams(has_side_effects=True),
        cost_estimate=pl.CostEstimate(
            flops=0, transcendentals=0, bytes_accessed=2 * nbytes),
    )(x)


# --------------------------------------------------------------------------
# Materialize path B (opt-in): lane-dense tiled VMEM streaming copy.
# --------------------------------------------------------------------------
def _copy_kernel(x_ref, o_ref):
    # Pure streaming copy of one lane-dense (tile_rows, 128) tile.
    o_ref[...] = x_ref[...]


def _vmem_streaming_copy(x, *, target_block_bytes=None):
    """Tiled, lane-dense, double-buffered VMEM copy (fusion/benchmark parity)."""
    itemsize = _itemsize(x.dtype)
    granule = _sublane_granule(x.dtype)
    rows = x.size // _LANES
    x2 = x.reshape(rows, _LANES)  # metadata-only for contiguous layouts

    if target_block_bytes is None:
        # ~4 MiB blocks on all current generations, never more than VMEM/16.
        target_block_bytes = int(
            min(4 << 20, max(1 << 20, _vmem_capacity_bytes() // 16)))

    row_bytes = _LANES * itemsize
    tile_rows = max(granule,
                    (target_block_bytes // row_bytes) // granule * granule)
    tile_rows = min(rows, tile_rows)
    # Guarantee >= 2 grid steps when possible so both v7x TensorCores get work.
    if rows >= 2 * granule:
        half = pl.cdiv(pl.cdiv(rows, 2), granule) * granule
        tile_rows = min(tile_rows, half)

    block_bytes = tile_rows * row_bytes
    cap = _vmem_capacity_bytes()
    # 4 double-buffered blocks (in + out) plus margin; clamped to half of VMEM.
    vmem_limit = int(min(cap // 2, max(16 << 20, 6 * block_bytes)))

    nbytes = x.size * itemsize
    grid = (pl.cdiv(rows, tile_rows),)
    return pl.pallas_call(
        _copy_kernel,
        out_shape=jax.ShapeDtypeStruct((rows, _LANES), x.dtype),
        grid_spec=pltpu.PrefetchScalarGridSpec(
            num_scalar_prefetch=0,
            grid=grid,
            in_specs=[pl.BlockSpec((tile_rows, _LANES), lambda i: (i, 0))],
            out_specs=pl.BlockSpec((tile_rows, _LANES), lambda i: (i, 0)),
        ),
        compiler_params=pltpu.CompilerParams(
            dimension_semantics=("parallel",),
            vmem_limit_bytes=vmem_limit,
        ),
        cost_estimate=pl.CostEstimate(
            flops=0, transcendentals=0, bytes_accessed=2 * nbytes),
    )(x2)


# --------------------------------------------------------------------------
# Public API
# --------------------------------------------------------------------------
def unsqueeze(x, dim, *, materialize=False, method="dma",
              min_bytes_for_kernel=1 << 20, target_block_bytes=None):
    """Pallas-backed equivalent of torch.Tensor.unsqueeze(dim).

    materialize=False (default): metadata-only, zero HBM traffic (recommended).
    materialize=True: copy the bytes into a fresh buffer.
        method="dma"  -> direct HBM->HBM async DMA (default, roofline copy)
        method="vmem" -> tiled lane-dense VMEM streaming copy (fusion parity)
    """
    ndim_out = x.ndim + 1
    if dim < 0:
        dim += ndim_out
    assert 0 <= dim < ndim_out, f"invalid dim {dim} for rank-{x.ndim} input"
    out_shape = x.shape[:dim] + (1,) + x.shape[dim:]

    if not materialize:
        # Unsqueeze is pure shape bookkeeping; never move data for it.
        return jnp.expand_dims(x, dim)

    nbytes = x.size * _itemsize(x.dtype)
    if x.size == 0 or x.ndim == 0 or nbytes < min_bytes_for_kernel:
        # Tiny/degenerate copies cannot beat XLA's native path; skip the kernel.
        return jnp.expand_dims(x, dim)

    if method == "vmem" and x.size % _LANES == 0:
        y2 = _vmem_streaming_copy(x, target_block_bytes=target_block_bytes)
        return y2.reshape(out_shape)

    # Default (and fallback for non-lane-aligned sizes): direct HBM->HBM DMA.
    y = _dma_copy(x)
    return jnp.expand_dims(y, dim)


class Unsqueeze:
    """Mirror of the PyTorch module: Unsqueeze(dim)(x) == x.unsqueeze(dim)."""

    def __init__(self, dim, materialize=False, method="dma"):
        self.dim = dim
        self.materialize = materialize
        self.method = method

    def __call__(self, x):
        return unsqueeze(x, self.dim, materialize=self.materialize,
                         method=self.method)


if __name__ == "__main__":
    key = jax.random.PRNGKey(0)
    # Small NCHW input consistent with an image-model feature map.
    x = jax.random.normal(key, (2, 4, 16, 16), dtype=jnp.float32)

    dim = 1  # Unsqueeze(dim=1): (2, 4, 16, 16) -> (2, 1, 4, 16, 16)
    ref = jnp.expand_dims(x, dim)

    # 1) Default (recommended) path: metadata-only, zero data movement.
    out_meta = jax.block_until_ready(Unsqueeze(dim)(x))
    assert out_meta.shape == ref.shape and out_meta.dtype == ref.dtype
    assert bool(jnp.array_equal(out_meta, ref))

    # 2) Materialize path, direct HBM->HBM DMA kernel (size gate overridden so
    #    the kernel actually runs on this small demo input).
    out_dma = jax.block_until_ready(
        unsqueeze(x, dim, materialize=True, method="dma",
                  min_bytes_for_kernel=0))
    assert out_dma.shape == ref.shape and out_dma.dtype == ref.dtype
    assert bool(jnp.array_equal(out_dma, ref))

    # 3) Materialize path, VMEM streaming copy with a tiny block budget to
    #    force a multi-step pipelined grid (tile_rows=8 -> grid of 2).
    out_vmem = jax.block_until_ready(
        unsqueeze(x, dim, materialize=True, method="vmem",
                  min_bytes_for_kernel=0, target_block_bytes=4096))
    assert out_vmem.shape == ref.shape
    assert bool(jnp.array_equal(out_vmem, ref))

    # 4) Trailing-dim unsqueeze: handled as pure metadata directly on x.
    out_last = jax.block_until_ready(unsqueeze(x, -1))
    assert out_last.shape == (2, 4, 16, 16, 1)
    assert bool(jnp.array_equal(out_last, jnp.expand_dims(x, -1)))

    print("KERNEL_OK")
</pallas_src>

<mosaic_0001>
module attributes {stable_mosaic.version = 11 : i64} {
  func.func @kernel(%arg0: memref<2x4x16x16xf32, #tpu.memory_space<any>>, %arg1: memref<2x4x16x16xf32, #tpu.memory_space<any>>, %arg2: memref<1x!tpu.dma_semaphore, #tpu.memory_space<semaphore_mem>>) attributes {dimension_semantics = [], scalar_prefetch = 0 : i64, scratch_operands = 1 : i64, tpu.core_type = #tpu.core_type<tc>} {
    %c0_i32 = arith.constant 0 : i32
    %0 = tpu.memref_slice %arg2[%c0_i32] : memref<1x!tpu.dma_semaphore, #tpu.memory_space<semaphore_mem>> -> memref<1x!tpu.dma_semaphore, #tpu.memory_space<semaphore_mem>>
    %1 = tpu.memref_squeeze %0 : memref<1x!tpu.dma_semaphore, #tpu.memory_space<semaphore_mem>> -> memref<!tpu.dma_semaphore, #tpu.memory_space<semaphore_mem>>
    tpu.enqueue_dma source(%arg0 : memref<2x4x16x16xf32, #tpu.memory_space<any>>) target(%arg1 : memref<2x4x16x16xf32, #tpu.memory_space<any>>) target_semaphore(%1 : memref<!tpu.dma_semaphore, #tpu.memory_space<semaphore_mem>>)
    %c0_i32_0 = arith.constant 0 : i32
    %2 = tpu.memref_slice %arg2[%c0_i32_0] : memref<1x!tpu.dma_semaphore, #tpu.memory_space<semaphore_mem>> -> memref<1x!tpu.dma_semaphore, #tpu.memory_space<semaphore_mem>>
    %3 = tpu.memref_squeeze %2 : memref<1x!tpu.dma_semaphore, #tpu.memory_space<semaphore_mem>> -> memref<!tpu.dma_semaphore, #tpu.memory_space<semaphore_mem>>
    tpu.wait_dma2 semaphore(%3 : memref<!tpu.dma_semaphore, #tpu.memory_space<semaphore_mem>>) src(%arg0 : memref<2x4x16x16xf32, #tpu.memory_space<any>>) dst(%arg1 : memref<2x4x16x16xf32, #tpu.memory_space<any>>)
    return
  }
}

</mosaic_0001>

<bundles_post_ra>
// kernel: tpu_custom_call.1
= control target key start
LH: loop header
LB: loop body
LE: loop exit
PB: predicated region body
PF: predicated region fallthrough
CT: control target
= control target key end

     0   :  { %s36_s6 = smov [#allocation2]   ;;  %s37_s7 = smov [#allocation3]   ;;  %s55_s0 = inlined_call_operand.hbm [shape: f32[2,4,16,16], index: 0, kind: input, shape index: {}]   ;;  %s56_s1 = inlined_call_operand.hbm [shape: f32[2,4,16,16], index: 1, kind: output, shape index: {}]  }
   0x1   :  { %s38_s8 = smov 0  }
   0x2   :  { %18 = dma.general %s55_s0, 2048, %s56_s1, %s36_s6, %s37_s7, [#allocation4], %s38_s8, 0  }
   0x3   :  { %34 = dma.done.wait [#allocation2], 2048 }
   0x4   :  { %35 = vsyncadd [#allocation2], 4294965248 }
   0x5   :  { %24 = vsyncmov [#allocation2] }
   0x8   :  { %s25_s13 = vpop.sfrf %24 }
   0x9   :  { %p30_p0 = scmp.ne.s32.totalorder %s25_s13, 0 }
   0xb   :  { %29 = shalt.err (%p30_p0)  }

</bundles_post_ra>
